<compile_context>
chip_gen: v7x
topology: tpu7x:2x2x1
jax: 0.10.0
libtpu: 0.0.40
codegen_flags: <defaults>
</compile_context>

<pallas_src>
import jax
import jax.numpy as jnp
from jax import lax
from jax.experimental import pallas as pl
from jax.experimental.pallas import tpu as pltpu


def bow_kernel(ids_ref, emb_ref, w1_ref, b1_ref, gamma_ref, beta_ref,
               w2_ref, b2_ref, labels_ref, loss_ref, logits_ref):
    B, S = ids_ref.shape
    V = emb_ref.shape[0]

    # ---- fused embedding lookup + sequence mean:  bow = (counts @ emb) / S ----
    # counts[b, v] = #{s : ids[b, s] == v}; built with S [B, V] VPU compares so
    # the only live intermediate is [B, V] (no [B*S, V] one-hot).
    ids = ids_ref[...]                                            # [B, S] int32
    vocab_iota = lax.broadcasted_iota(jnp.int32, (B, V), 1)       # [B, V]
    counts = jnp.zeros((B, V), jnp.float32)
    for s in range(S):                                            # static unroll, S small
        counts = counts + (vocab_iota == ids[:, s:s + 1]).astype(jnp.float32)
    bow = jnp.dot(counts, emb_ref[...],
                  preferred_element_type=jnp.float32) * (1.0 / S)  # [B, H] single MXU pass

    # ---- l1 + BatchNorm1d (training-mode batch statistics, eps=1e-5) + ReLU ----
    # (b1 is mathematically cancelled by the batch-mean subtraction, but we keep
    #  it for bit-level parity with the PyTorch forward.)
    h = jnp.dot(bow, w1_ref[...], preferred_element_type=jnp.float32) + b1_ref[...]
    mu = jnp.mean(h, axis=0, keepdims=True)
    d = h - mu
    var = jnp.mean(d * d, axis=0, keepdims=True)                  # biased, like PyTorch BN
    x = gamma_ref[...] * d * lax.rsqrt(var + 1e-5) + beta_ref[...]
    x = jnp.maximum(x, 0.0)

    # TODO(synk): nn.Dropout(p=0.5) treated as identity (inference mode); training-mode
    # dropout would need pltpu.prng_random_bits and cannot bit-match torch RNG anyway.

    # ---- l2 (out_features=1): VPU multiply + lane reduce (no N=1 MXU matmul) ----
    logits = jnp.sum(x * w2_ref[...], axis=-1, keepdims=True) + b2_ref[0]   # [B, 1]

    # ---- BCEWithLogitsLoss, numerically stable: max(z,0) - z*y + log(1+exp(-|z|)) ----
    lbl = labels_ref[...]                                         # [B, 1]
    bce = jnp.maximum(logits, 0.0) - logits * lbl + jnp.log1p(jnp.exp(-jnp.abs(logits)))
    loss_ref[0] = jnp.sum(bce) * (1.0 / B)                        # scalar -> SMEM
    logits_ref[...] = logits


def bow_forward(ids, emb, w1, b1, gamma, beta, w2, b2, labels):
    """ids: [B, S] int32; labels: [B] float32. Returns (loss scalar, logits [B])."""
    B, S = ids.shape
    H = emb.shape[1]

    ids_i32 = ids.astype(jnp.int32)
    labels_2d = labels.reshape(B, 1).astype(jnp.float32)
    b1_2d = b1.reshape(1, H)
    gamma_2d = gamma.reshape(1, H)
    beta_2d = beta.reshape(1, H)
    w2_row = w2.reshape(1, H)          # l2 weight as a lane row for the VPU reduce
    b2_1d = b2.reshape(1)              # scalar bias -> SMEM

    vmem = pl.BlockSpec(memory_space=pltpu.MemorySpace.VMEM)
    smem = pl.BlockSpec(memory_space=pltpu.MemorySpace.SMEM)

    loss, logits = pl.pallas_call(
        bow_kernel,
        out_shape=(jax.ShapeDtypeStruct((1,), jnp.float32),    # loss (SMEM scalar)
                   jax.ShapeDtypeStruct((B, 1), jnp.float32)), # logits
        in_specs=[vmem,   # ids [B, S]
                  vmem,   # emb [V, H]   (TODO(synk): scalar-prefetch/DMA row gather at large V)
                  vmem,   # w1  [H, H]
                  vmem,   # b1  [1, H]
                  vmem,   # gamma [1, H]
                  vmem,   # beta  [1, H]
                  vmem,   # w2 row [1, H]
                  smem,   # b2 (1,)
                  vmem],  # labels [B, 1]
        out_specs=(smem, vmem),
    )(ids_i32, emb, w1, b1_2d, gamma_2d, beta_2d, w2_row, b2_1d, labels_2d)
    return loss[0], logits[:, 0]


def bow_forward_ref(ids, emb, w1, b1, gamma, beta, w2, b2, labels):
    """Pure-JAX reference with identical math (for correctness check)."""
    B = ids.shape[0]
    bow = jnp.mean(emb[ids], axis=1)                                          # [B, H]
    h = jnp.dot(bow, w1, precision=lax.Precision.HIGHEST) + b1
    mu = jnp.mean(h, axis=0, keepdims=True)
    var = jnp.mean((h - mu) ** 2, axis=0, keepdims=True)
    x = gamma * (h - mu) * lax.rsqrt(var + 1e-5) + beta
    x = jnp.maximum(x, 0.0)
    logits = (jnp.dot(x, w2, precision=lax.Precision.HIGHEST) + b2)[:, 0]     # [B]
    z, y = logits, labels
    bce = jnp.maximum(z, 0.0) - z * y + jnp.log1p(jnp.exp(-jnp.abs(z)))
    return jnp.mean(bce), logits


if __name__ == "__main__":
    # Small shapes consistent with the module's forward.
    VOCAB = 64      # vocab_size
    HIDDEN = 32     # hidden_units
    B = 8           # batch (number of bag-of-words documents)
    S = 8           # tokens per document (fixed length here)

    key = jax.random.PRNGKey(0)
    k_ids, k_emb, k_w1, k_b1, k_w2, k_b2, k_lbl = jax.random.split(key, 7)

    # deterministic synthetic parameters (shapes from BOW_model.__init__)
    emb = jax.random.normal(k_emb, (VOCAB, HIDDEN), dtype=jnp.float32)          # nn.Embedding
    lim1 = 1.0 / jnp.sqrt(HIDDEN)
    w1 = jax.random.uniform(k_w1, (HIDDEN, HIDDEN), jnp.float32, -lim1, lim1)   # l1 ([in, out])
    b1 = jax.random.uniform(k_b1, (HIDDEN,), jnp.float32, -lim1, lim1)
    gamma = jnp.ones((HIDDEN,), jnp.float32)                                    # l1_bn weight
    beta = jnp.zeros((HIDDEN,), jnp.float32)                                    # l1_bn bias
    w2 = jax.random.uniform(k_w2, (HIDDEN, 1), jnp.float32, -lim1, lim1)        # l2 ([in, out])
    b2 = jax.random.uniform(k_b2, (1,), jnp.float32, -lim1, lim1)

    ids = jax.random.randint(k_ids, (B, S), 0, VOCAB, dtype=jnp.int32)
    labels = jax.random.bernoulli(k_lbl, 0.5, (B,)).astype(jnp.float32)

    loss, logits = bow_forward(ids, emb, w1, b1, gamma, beta, w2, b2, labels)
    jax.block_until_ready((loss, logits))
    assert logits.shape == (B,) and loss.shape == ()

    # Correctness check against a pure-JAX reference.
    loss_ref, logits_ref = bow_forward_ref(ids, emb, w1, b1, gamma, beta, w2, b2, labels)
    assert jnp.allclose(logits, logits_ref, atol=1e-3, rtol=1e-3), (logits, logits_ref)
    assert jnp.allclose(loss, loss_ref, atol=1e-3, rtol=1e-3), (loss, loss_ref)

    print("KERNEL_OK")
</pallas_src>

<mosaic_0001>
module attributes {stable_mosaic.version = 11 : i64} {
  func.func @bow_kernel(%arg0: memref<8x8xi32, #tpu.memory_space<vmem>>, %arg1: memref<64x32xf32, #tpu.memory_space<vmem>>, %arg2: memref<32x32xf32, #tpu.memory_space<vmem>>, %arg3: memref<1x32xf32, #tpu.memory_space<vmem>>, %arg4: memref<1x32xf32, #tpu.memory_space<vmem>>, %arg5: memref<1x32xf32, #tpu.memory_space<vmem>>, %arg6: memref<1x32xf32, #tpu.memory_space<vmem>>, %arg7: memref<1xf32, #tpu.memory_space<smem>>, %arg8: memref<8x1xf32, #tpu.memory_space<vmem>>, %arg9: memref<1xf32, #tpu.memory_space<smem>>, %arg10: memref<8x1xf32, #tpu.memory_space<vmem>>) attributes {dimension_semantics = [], scalar_prefetch = 0 : i64, scratch_operands = 0 : i64, tpu.core_type = #tpu.core_type<tc>} {
    %c0 = arith.constant 0 : index
    %c0_0 = arith.constant 0 : index
    %0 = vector.load %arg0[%c0, %c0_0] : memref<8x8xi32, #tpu.memory_space<vmem>>, vector<8x8xi32>
    %1 = tpu.iota {dimensions = array<i32: 1>} : vector<8x64xi32>
    %cst = arith.constant 0.000000e+00 : f32
    %2 = vector.broadcast %cst : f32 to vector<8x64xf32>
    %3 = vector.extract_strided_slice %0 {offsets = [0, 0], sizes = [8, 1], strides = [1, 1]} : vector<8x8xi32> to vector<8x1xi32>
    %4 = vector.broadcast %3 : vector<8x1xi32> to vector<8x64xi32>
    %5 = arith.cmpi eq, %1, %4 : vector<8x64xi32>
    %6 = arith.extui %5 : vector<8x64xi1> to vector<8x64xi32>
    %7 = arith.sitofp %6 : vector<8x64xi32> to vector<8x64xf32>
    %8 = arith.addf %2, %7 : vector<8x64xf32>
    %9 = vector.extract_strided_slice %0 {offsets = [0, 1], sizes = [8, 1], strides = [1, 1]} : vector<8x8xi32> to vector<8x1xi32>
    %10 = vector.broadcast %9 : vector<8x1xi32> to vector<8x64xi32>
    %11 = arith.cmpi eq, %1, %10 : vector<8x64xi32>
    %12 = arith.extui %11 : vector<8x64xi1> to vector<8x64xi32>
    %13 = arith.sitofp %12 : vector<8x64xi32> to vector<8x64xf32>
    %14 = arith.addf %8, %13 : vector<8x64xf32>
    %15 = vector.extract_strided_slice %0 {offsets = [0, 2], sizes = [8, 1], strides = [1, 1]} : vector<8x8xi32> to vector<8x1xi32>
    %16 = vector.broadcast %15 : vector<8x1xi32> to vector<8x64xi32>
    %17 = arith.cmpi eq, %1, %16 : vector<8x64xi32>
    %18 = arith.extui %17 : vector<8x64xi1> to vector<8x64xi32>
    %19 = arith.sitofp %18 : vector<8x64xi32> to vector<8x64xf32>
    %20 = arith.addf %14, %19 : vector<8x64xf32>
    %21 = vector.extract_strided_slice %0 {offsets = [0, 3], sizes = [8, 1], strides = [1, 1]} : vector<8x8xi32> to vector<8x1xi32>
    %22 = vector.broadcast %21 : vector<8x1xi32> to vector<8x64xi32>
    %23 = arith.cmpi eq, %1, %22 : vector<8x64xi32>
    %24 = arith.extui %23 : vector<8x64xi1> to vector<8x64xi32>
    %25 = arith.sitofp %24 : vector<8x64xi32> to vector<8x64xf32>
    %26 = arith.addf %20, %25 : vector<8x64xf32>
    %27 = vector.extract_strided_slice %0 {offsets = [0, 4], sizes = [8, 1], strides = [1, 1]} : vector<8x8xi32> to vector<8x1xi32>
    %28 = vector.broadcast %27 : vector<8x1xi32> to vector<8x64xi32>
    %29 = arith.cmpi eq, %1, %28 : vector<8x64xi32>
    %30 = arith.extui %29 : vector<8x64xi1> to vector<8x64xi32>
    %31 = arith.sitofp %30 : vector<8x64xi32> to vector<8x64xf32>
    %32 = arith.addf %26, %31 : vector<8x64xf32>
    %33 = vector.extract_strided_slice %0 {offsets = [0, 5], sizes = [8, 1], strides = [1, 1]} : vector<8x8xi32> to vector<8x1xi32>
    %34 = vector.broadcast %33 : vector<8x1xi32> to vector<8x64xi32>
    %35 = arith.cmpi eq, %1, %34 : vector<8x64xi32>
    %36 = arith.extui %35 : vector<8x64xi1> to vector<8x64xi32>
    %37 = arith.sitofp %36 : vector<8x64xi32> to vector<8x64xf32>
    %38 = arith.addf %32, %37 : vector<8x64xf32>
    %39 = vector.extract_strided_slice %0 {offsets = [0, 6], sizes = [8, 1], strides = [1, 1]} : vector<8x8xi32> to vector<8x1xi32>
    %40 = vector.broadcast %39 : vector<8x1xi32> to vector<8x64xi32>
    %41 = arith.cmpi eq, %1, %40 : vector<8x64xi32>
    %42 = arith.extui %41 : vector<8x64xi1> to vector<8x64xi32>
    %43 = arith.sitofp %42 : vector<8x64xi32> to vector<8x64xf32>
    %44 = arith.addf %38, %43 : vector<8x64xf32>
    %45 = vector.extract_strided_slice %0 {offsets = [0, 7], sizes = [8, 1], strides = [1, 1]} : vector<8x8xi32> to vector<8x1xi32>
    %46 = vector.broadcast %45 : vector<8x1xi32> to vector<8x64xi32>
    %47 = arith.cmpi eq, %1, %46 : vector<8x64xi32>
    %48 = arith.extui %47 : vector<8x64xi1> to vector<8x64xi32>
    %49 = arith.sitofp %48 : vector<8x64xi32> to vector<8x64xf32>
    %50 = arith.addf %44, %49 : vector<8x64xf32>
    %c0_1 = arith.constant 0 : index
    %c0_2 = arith.constant 0 : index
    %51 = vector.load %arg1[%c0_1, %c0_2] : memref<64x32xf32, #tpu.memory_space<vmem>>, vector<64x32xf32>
    %cst_3 = arith.constant dense<0.000000e+00> : vector<8x32xf32>
    %52 = tpu.matmul %50, %51, %cst_3 {dimension_numbers = #tpu.dot_dimension_numbers<[1], [0], [0], [1], [0, 0, 1, 1], [], []>} : vector<8x64xf32>, vector<64x32xf32>, vector<8x32xf32> -> vector<8x32xf32>
    %cst_4 = arith.constant 1.250000e-01 : f32
    %53 = vector.broadcast %cst_4 : f32 to vector<8x32xf32>
    %54 = arith.mulf %52, %53 : vector<8x32xf32>
    %c0_5 = arith.constant 0 : index
    %c0_6 = arith.constant 0 : index
    %55 = vector.load %arg2[%c0_5, %c0_6] : memref<32x32xf32, #tpu.memory_space<vmem>>, vector<32x32xf32>
    %cst_7 = arith.constant dense<0.000000e+00> : vector<8x32xf32>
    %56 = tpu.matmul %54, %55, %cst_7 {dimension_numbers = #tpu.dot_dimension_numbers<[1], [0], [0], [1], [0, 0, 1, 1], [], []>} : vector<8x32xf32>, vector<32x32xf32>, vector<8x32xf32> -> vector<8x32xf32>
    %c0_8 = arith.constant 0 : index
    %c0_9 = arith.constant 0 : index
    %57 = vector.load %arg3[%c0_8, %c0_9] : memref<1x32xf32, #tpu.memory_space<vmem>>, vector<1x32xf32>
    %58 = vector.broadcast %57 : vector<1x32xf32> to vector<8x32xf32>
    %59 = arith.addf %56, %58 : vector<8x32xf32>
    %cst_10 = arith.constant dense<0.000000e+00> : vector<32xf32>
    %60 = vector.multi_reduction <add>, %59, %cst_10 [0] : vector<8x32xf32> to vector<32xf32>
    %61 = vector.shape_cast %60 : vector<32xf32> to vector<1x32xf32>
    %cst_11 = arith.constant 8.000000e+00 : f32
    %62 = vector.broadcast %cst_11 : f32 to vector<1x32xf32>
    %63 = arith.divf %61, %62 : vector<1x32xf32>
    %64 = vector.broadcast %63 : vector<1x32xf32> to vector<8x32xf32>
    %65 = arith.subf %59, %64 : vector<8x32xf32>
    %66 = arith.mulf %65, %65 : vector<8x32xf32>
    %cst_12 = arith.constant dense<0.000000e+00> : vector<32xf32>
    %67 = vector.multi_reduction <add>, %66, %cst_12 [0] : vector<8x32xf32> to vector<32xf32>
    %68 = vector.shape_cast %67 : vector<32xf32> to vector<1x32xf32>
    %cst_13 = arith.constant 8.000000e+00 : f32
    %69 = vector.broadcast %cst_13 : f32 to vector<1x32xf32>
    %70 = arith.divf %68, %69 : vector<1x32xf32>
    %c0_14 = arith.constant 0 : index
    %c0_15 = arith.constant 0 : index
    %71 = vector.load %arg4[%c0_14, %c0_15] : memref<1x32xf32, #tpu.memory_space<vmem>>, vector<1x32xf32>
    %72 = vector.broadcast %71 : vector<1x32xf32> to vector<8x32xf32>
    %73 = arith.mulf %72, %65 : vector<8x32xf32>
    %cst_16 = arith.constant 9.99999974E-6 : f32
    %74 = vector.broadcast %cst_16 : f32 to vector<1x32xf32>
    %75 = arith.addf %70, %74 : vector<1x32xf32>
    %76 = math.rsqrt %75 : vector<1x32xf32>
    %77 = vector.broadcast %76 : vector<1x32xf32> to vector<8x32xf32>
    %78 = arith.mulf %73, %77 : vector<8x32xf32>
    %c0_17 = arith.constant 0 : index
    %c0_18 = arith.constant 0 : index
    %79 = vector.load %arg5[%c0_17, %c0_18] : memref<1x32xf32, #tpu.memory_space<vmem>>, vector<1x32xf32>
    %80 = vector.broadcast %79 : vector<1x32xf32> to vector<8x32xf32>
    %81 = arith.addf %78, %80 : vector<8x32xf32>
    %cst_19 = arith.constant 0.000000e+00 : f32
    %82 = vector.broadcast %cst_19 : f32 to vector<8x32xf32>
    %83 = arith.maximumf %81, %82 : vector<8x32xf32>
    %c0_20 = arith.constant 0 : index
    %c0_21 = arith.constant 0 : index
    %84 = vector.load %arg6[%c0_20, %c0_21] : memref<1x32xf32, #tpu.memory_space<vmem>>, vector<1x32xf32>
    %85 = vector.broadcast %84 : vector<1x32xf32> to vector<8x32xf32>
    %86 = arith.mulf %83, %85 : vector<8x32xf32>
    %cst_22 = arith.constant dense<0.000000e+00> : vector<8xf32>
    %87 = vector.multi_reduction <add>, %86, %cst_22 [1] : vector<8x32xf32> to vector<8xf32>
    %88 = vector.shape_cast %87 : vector<8xf32> to vector<8x1xf32>
    %c0_23 = arith.constant 0 : index
    %89 = memref.load %arg7[%c0_23] : memref<1xf32, #tpu.memory_space<smem>>
    %90 = vector.broadcast %89 : f32 to vector<8x1xf32>
    %91 = arith.addf %88, %90 : vector<8x1xf32>
    %c0_24 = arith.constant 0 : index
    %c0_25 = arith.constant 0 : index
    %92 = vector.load %arg8[%c0_24, %c0_25] : memref<8x1xf32, #tpu.memory_space<vmem>>, vector<8x1xf32>
    %cst_26 = arith.constant 0.000000e+00 : f32
    %93 = vector.broadcast %cst_26 : f32 to vector<8x1xf32>
    %94 = arith.maximumf %91, %93 : vector<8x1xf32>
    %95 = arith.mulf %91, %92 : vector<8x1xf32>
    %96 = arith.subf %94, %95 : vector<8x1xf32>
    %97 = math.absf %91 : vector<8x1xf32>
    %cst_27 = arith.constant 0.000000e+00 : f32
    %98 = vector.broadcast %cst_27 : f32 to vector<8x1xf32>
    %99 = arith.subf %98, %97 : vector<8x1xf32>
    %100 = math.exp %99 : vector<8x1xf32>
    %101 = math.log1p %100 : vector<8x1xf32>
    %102 = arith.addf %96, %101 : vector<8x1xf32>
    %103 = vector.shape_cast %102 : vector<8x1xf32> to vector<1x8x1xf32>
    %cst_28 = arith.constant dense<0.000000e+00> : vector<1xf32>
    %104 = vector.multi_reduction <add>, %103, %cst_28 [1, 2] : vector<1x8x1xf32> to vector<1xf32>
    %105 = vector.shape_cast %104 : vector<1xf32> to vector<1x1x1xf32>
    %106 = vector.extract %105[0, 0, 0] : f32 from vector<1x1x1xf32>
    %cst_29 = arith.constant 1.250000e-01 : f32
    %107 = arith.mulf %106, %cst_29 : f32
    %c0_30 = arith.constant 0 : index
    %108 = memref.load %arg9[%c0_30] : memref<1xf32, #tpu.memory_space<smem>>
    memref.store %107, %arg9[%c0_30] : memref<1xf32, #tpu.memory_space<smem>>
    %c0_31 = arith.constant 0 : index
    %c0_32 = arith.constant 0 : index
    %109 = vector.load %arg10[%c0_31, %c0_32] : memref<8x1xf32, #tpu.memory_space<vmem>>, vector<8x1xf32>
    tpu.vector_store %arg10[%c0_31, %c0_32], %91 {strides = array<i32>} : memref<8x1xf32, #tpu.memory_space<vmem>>, vector<8x1xf32>,
    return
  }
}

</mosaic_0001>

<bundles_post_ra>
// kernel: tpu_custom_call.1
= control target key start
LH: loop header
LB: loop body
LE: loop exit
PB: predicated region body
PF: predicated region fallthrough
CT: control target
= control target key end

     0   :  { %v483_v1 = vmov 2   ;;  %v484_v2 = vmov 0   ;;  %s628_s0 = inlined_call_operand.vmem [shape: s32[8,8], index: 0, kind: input, shape index: {}]   ;;  %s629_s1 = inlined_call_operand.vmem [shape: f32[64,32], index: 1, kind: input, shape index: {}]   ;;  %s630_s2 = inlined_call_operand.vmem [shape: f32[32,32], index: 2, kind: input, shape index: {}]   ;;  %s631_s3 = inlined_call_operand.vmem [shape: f32[1,32], index: 3, kind: input, shape index: {}]   ;;  %s632_s4 = inlined_call_operand.vmem [shape: f32[1,32], index: 4, kind: input, shape index: {}]   ;;  %s633_s5 = inlined_call_operand.vmem [shape: f32[1,32], index: 5, kind: input, shape index: {}]   ;;  %s634_s6 = inlined_call_operand.vmem [shape: f32[1,32], index: 6, kind: input, shape index: {}]   ;;  %s635_s7 = inlined_call_operand.<no memory space> [shape: f32[1], index: 7, kind: input, shape index: {}]   ;;  %s636_s8 = inlined_call_operand.vmem [shape: f32[8,1], index: 8, kind: input, shape index: {}]   ;;  %s637_s9 = inlined_call_operand.hbm [shape: f32[1], index: 9, kind: output, shape index: {0}]   ;;  %s638_s10 = inlined_call_operand.vmem [shape: f32[8,1], index: 10, kind: output, shape index: {1}]  }
   0x1   :  { %v36_v0 = vld [vmem:[%s628_s0] sm:$0xff]  ;;  %458 = vset.pattern.permute.xlu1 %v483_v1  ;;  %456 = vset.pattern.permute.xlu0 %v484_v2 }
   0x2   :  { %17 = vsyncpa [#allocation4], 0  ;;  %54 = vperm.xlu1 %458, %v36_v0   ;;  %40 = vperm.xlu0 %456, %v36_v0   ;;  %v485_v3 = vmov 3   ;;  %v486_v4 = vmov 1   ;;  %v95_v5 = vld [vmem:[%s629_s1] sm:$0xff]  ;;  %v96_v6 = vld [vmem:[%s629_s1 + $0x8] sm:$0xff]  ;;  %v37_v26 = vlaneseq }
   0x3   :  { %v425_v7 = vpack.c.bf16 %v96_v6, %v95_v5  ;;  %v487_v8 = vmov 0.0|0.0   ;;  %v488_v9 = vmov 4   ;;  %v489_v10 = vmov 5   ;;  %v97_v11 = vld [vmem:[%s629_s1 + $0x10] sm:$0xff]  ;;  %v98_v12 = vld [vmem:[%s629_s1 + $0x18] sm:$0xff]  ;;  %v99_v15 = vld [vmem:[%s629_s1 + $0x20] sm:$0xff] }
   0x4   :  { %424 = vmatprep.subr.bf16.mxu0 %v487_v8  ;;  %436 = vmatprep.subr.bf16.mxu1 %v487_v8  ;;  %v428_v13 = vpack.c.bf16 %v98_v12, %v97_v11  ;;  %v490_v14 = vmov 6   ;;  %v100_v16 = vld [vmem:[%s629_s1 + $0x28] sm:$0xff]  ;;  %v491_v17 = vmov 7   ;;  %v101_v19 = vld [vmem:[%s629_s1 + $0x30] sm:$0xff]  ;;  %v102_v20 = vld [vmem:[%s629_s1 + $0x38] sm:$0xff]  ;;  %vm492_vm0 = vmmov 0  }
   0x5   :  { %426 = vmatpush3.bf16.msra.mxu0 %v425_v7  ;;  %v431_v18 = vpack.c.bf16 %v100_v16, %v99_v15  ;;  %v434_v21 = vpack.c.bf16 %v102_v20, %v101_v19  ;;  %v493_v22 = vmov 0.0   ;;  %v178_v23 = vld [vmem:[%s630_s2] sm:$0xff]  ;;  %v179_v24 = vld [vmem:[%s630_s2 + $0x8] sm:$0xff]  ;;  %v38_v29 = vand.u32 127, %v37_v26  ;;  %v180_v51 = vld [vmem:[%s630_s2 + $0x10] sm:$0xff]  ;;  %s471_s26 = scalar_lea.hbm %s637_s9, 16 }
   0x6   :  { %459 = vset.pattern.permute.xlu1 %v485_v3  ;;  %457 = vset.pattern.permute.xlu0 %v486_v4  ;;  %v437_v25 = vpack.c.bf16 %v179_v24, %v178_v23  ;;  %vm103_vm9 = vcmask 523264   ;;  %v181_v52 = vld [vmem:[%s630_s2 + $0x18] sm:$0xff]  ;;  %vm189_vm10 = vcmask 261120   ;;  %v375_v57 = vld [vmem:[%s631_s3] ss:$0 sm:$0xff]  ;;  %v314_v26 = vstv %s635_s7  ;;  %p472_p0 = scmp.ne.s32.totalorder %s637_s9, %s471_s26  ;;  %p475_p1 = scmp.lt.u32.totalorder %s471_s26, %s637_s9 }
   0x7   :  { %61 = vperm.xlu1 %459, %v36_v0   ;;  %47 = vperm.xlu0 %457, %v36_v0   ;;  %v440_v53 = vpack.c.bf16 %v181_v52, %v180_v51  ;;  %v377_v16 = vld [vmem:[%s632_s4] ss:$0 sm:$0xff]  ;;  %vm334_vm11 = vcmask 7168  }
   0x8   :  { %427 = vmatprep.subr.bf16.mxu0 %v487_v8  ;;  %410 = vmatprep.mubr.msk.f32.mxu0 %vm492_vm0, %v493_v22  ;;  %v378_v19 = vld [vmem:[%s633_s5] ss:$0 sm:$0xff]  ;;  %p477_p2 = pnand %p475_p1, %p472_p0 }
   0x9   :  { %429 = vmatpush3.bf16.msra.mxu0 %v428_v13  ;;  %421 = vmatprep.mubr.msk.f32.mxu1 %vm492_vm0, %v493_v22 }
   0xa   :  { %430 = vmatprep.subr.bf16.mxu0 %v487_v8  ;;  %438 = vmatpush3.bf16.msra.mxu1 %v437_v25 }
   0xb   :  { %460 = vset.pattern.permute.xlu1 %v488_v9  ;;  %461 = vset.pattern.permute.xlu0 %v489_v10 }
   0xc   :  { %68 = vperm.xlu1 %460, %v36_v0   ;;  %75 = vperm.xlu0 %461, %v36_v0  }
   0xd   :  { %432 = vmatpush3.bf16.msra.mxu0 %v431_v18  ;;  %439 = vmatprep.subr.bf16.mxu1 %v487_v8 }
   0xe   :  { %433 = vmatprep.subr.bf16.mxu0 %v487_v8  ;;  %441 = vmatpush3.bf16.msra.mxu1 %v440_v53 }
  0x10   :  { %462 = vset.pattern.permute.xlu1 %v490_v14  ;;  %464 = vset.pattern.permute.xlu0 %v491_v17 }
  0x11   :  { %82 = vperm.xlu1 %462, %v36_v0   ;;  %435 = vmatpush3.bf16.msra.mxu0 %v434_v21 }
  0x15   :  { %463 = vset.pattern.permute.xlu1 %v491_v17 }
  0x16   :  { %89 = vperm.xlu1 %463, %v36_v0  }
  0x81   :  { %v55_v27 = vpop.permute.xlu1 %54  ;;  %v41_v28 = vpop.permute.xlu0 %40 }
  0x82   :  { %vm42_vm1 = vcmp.eq.s32.totalorder %v38_v29, %v41_v28  ;;  %vm56_vm2 = vcmp.eq.s32.totalorder %v38_v29, %v55_v27 }
  0x83   :  { %v366_v32 = vsel %vm42_vm1, 1.0, %v493_v22  ;;  %v368_v35 = vsel %vm56_vm2, 1.0, %v493_v22 }
  0x86   :  { %v62_v30 = vpop.permute.xlu1 %61  ;;  %v48_v31 = vpop.permute.xlu0 %47 }
  0x87   :  { %vm49_vm3 = vcmp.eq.s32.totalorder %v38_v29, %v48_v31  ;;  %vm63_vm4 = vcmp.eq.s32.totalorder %v38_v29, %v62_v30 }
  0x88   :  { %v367_v33 = vsel %vm49_vm3, 1.0, %v493_v22  ;;  %v369_v39 = vsel %vm63_vm4, 1.0, %v493_v22 }
  0x89   :  { %v52_v34 = vadd.f32 %v367_v33, %v366_v32 }
  0x8b   :  { %v59_v36 = vadd.f32 %v368_v35, %v52_v34  ;;  %v69_v37 = vpop.permute.xlu1 %68  ;;  %v76_v38 = vpop.permute.xlu0 %75  ;;  %v316_v35 = vld [vmem:[%s636_s8] sm:$0xff] }
  0x8c   :  { %vm70_vm5 = vcmp.eq.s32.totalorder %v38_v29, %v69_v37  ;;  %vm77_vm6 = vcmp.eq.s32.totalorder %v38_v29, %v76_v38 }
  0x8d   :  { %v66_v40 = vadd.f32 %v369_v39, %v59_v36  ;;  %v370_v41 = vsel %vm70_vm5, 1.0, %v493_v22  ;;  %v371_v43 = vsel %vm77_vm6, 1.0, %v493_v22 }
  0x8f   :  { %v73_v42 = vadd.f32 %v370_v41, %v66_v40 }
  0x90   :  { %v83_v44 = vpop.permute.xlu1 %82 }
  0x91   :  { %vm84_vm7 = vcmp.eq.s32.totalorder %v38_v29, %v83_v44  ;;  %v80_v45 = vadd.f32 %v371_v43, %v73_v42 }
  0x92   :  { %v372_v46 = vsel %vm84_vm7, 1.0, %v493_v22 }
  0x93   :  { %v87_v48 = vadd.f32 %v372_v46, %v80_v45 }
  0x95   :  { %v90_v47 = vpop.permute.xlu1 %89 }
  0x96   :  { %vm91_vm8 = vcmp.eq.s32.totalorder %v38_v29, %v90_v47 }
  0x97   :  { %v373_v49 = vsel %vm91_vm8, 1.0, %v493_v22  ;;  %v379_v22 = vld [vmem:[%s634_s6] ss:$0 sm:$0xff] }
  0x98   :  { %v94_v50 = vadd.f32 %v373_v49, %v87_v48 }
  0x9a   :  { %411 = vmatmul.mubr.msk.f32.vlgmr.msra.gmra.mrb[0].mxu0 %vm103_vm9, %v94_v50 }
 0x16d   :  { %v173_v54 = vpop.f32.mrb[0].mxu0 }
 0x16e   :  { %v177_v55 = vmul.f32 0.125, %v173_v54  ;;  %v412_v56 = vpop.f32.mrb[1].mxu0 }
 0x170   :  { %422 = vmatmul.mubr.msk.f32.vlgmr.msra.gmra.mrb[0].mxu1 %vm189_vm10, %v177_v55 }
 0x243   :  { %v259_v58 = vpop.f32.mrb[0].mxu1 }
 0x244   :  { %v260_v59 = vadd.f32 %v375_v57, %v259_v58  ;;  %v423_v60 = vpop.f32.mrb[1].mxu1 }
 0x246   :  { %v263_v61 = vsel %vm189_vm10, %v260_v59, 0.0 }
 0x247   :  { %v264_v62 = vrot.slane %v263_v61, 4 }
 0x249   :  { %v265_v63 = vadd.f32 %v264_v62, %v263_v61 }
 0x24b   :  { %v266_v0 = vrot.slane %v265_v63, 2 }
 0x24d   :  { %v267_v1 = vadd.f32 %v266_v0, %v265_v63 }
 0x24f   :  { %v268_v2 = vrot.slane %v267_v1, 1 }
 0x251   :  { %v269_v3 = vadd.f32 %v268_v2, %v267_v1 }
 0x253   :  { %v271_v4 = vmul.f32 0.125, %v269_v3 }
 0x255   :  { %v272_v5 = vsub.f32 %v260_v59, %v271_v4 }
 0x257   :  { %v273_v6 = vmul.f32 %v272_v5, %v272_v5  ;;  %v289_v17 = vmul.f32 %v377_v16, %v272_v5 }
 0x259   :  { %v274_v7 = vsel %vm189_vm10, %v273_v6, 0.0 }
 0x25a   :  { %v275_v8 = vrot.slane %v274_v7, 4 }
 0x25c   :  { %v276_v9 = vadd.f32 %v275_v8, %v274_v7 }
 0x25e   :  { %v277_v10 = vrot.slane %v276_v9, 2 }
 0x260   :  { %v278_v11 = vadd.f32 %v277_v10, %v276_v9 }
 0x262   :  { %v279_v12 = vrot.slane %v278_v11, 1 }
 0x264   :  { %v280_v13 = vadd.f32 %v279_v12, %v278_v11 }
 0x266   :  { %v281_v14 = vmul.f32 0.125, %v280_v13 }
 0x268   :  { %v290_v15 = vadd.f32 1e-05, %v281_v14 }
 0x26a   :  { %465 = vrsqrt.f32 %v290_v15 }
 0x274   :  { %v466_v18 = vpop.eup %465 }
 0x275   :  { %v292_v20 = vmul.f32 %v466_v18, %v289_v17 }
 0x277   :  { %v300_v21 = vadd.f32 %v378_v19, %v292_v20 }
 0x279   :  { %v301_v23 = vmax.f32 %v300_v21, 0.0 }
 0x27b   :  { %v309_v24 = vmul.f32 %v379_v22, %v301_v23 }
 0x27d   :  { %v310_v25 = vsel %vm189_vm10, %v309_v24, 0.0 }
 0x27e   :  { %311 = vadd.xlane.f32.xlu0 %v310_v25 }
 0x30b   :  { %v312_v27 = vpop.xlane.xlu0 %311 }
 0x30c   :  { %v315_v28 = vadd.f32 %v314_v26, %v312_v27 }
 0x30e   :  { %v320_v29 = vand.u32 2147483647, %v315_v28  ;;  %348 = vst.msk [vmem:[%s638_s10] sm:$0xff] %vm334_vm11, %v315_v28  ;;  %v317_v37 = vmax.f32 %v315_v28, 0.0  ;;  %v318_v38 = vmul.f32 %v316_v35, %v315_v28 }
 0x310   :  { %v321_v30 = vsub.f32 0.0, %v320_v29  ;;  %v319_v43 = vsub.f32 %v317_v37, %v318_v38 }
 0x312   :  { %v322_v31 = vmul.f32 1.442695, %v321_v30 }
 0x314   :  { %467 = vpow2.f32 %v322_v31 }
 0x31e   :  { %v468_v32 = vpop.eup %467 }
 0x31f   :  { %v324_v33 = vadd.f32 1.0, %v468_v32  ;;  %v327_v34 = vmul.f32 -0.5, %v468_v32  ;;  %v330_v39 = vand.u32 2147483647, %v468_v32 }
 0x321   :  { %469 = vlog2.f32 %v324_v33  ;;  %v328_v36 = vadd.f32 1.0, %v327_v34  ;;  %vm331_vm12 = vcmp.lt.f32.partialorder %v330_v39, 0.0004427343 }
 0x323   :  { %v329_v42 = vmul.f32 %v468_v32, %v328_v36 }
 0x32b   :  { %v470_v40 = vpop.eup %469 }
 0x32c   :  { %v326_v41 = vmul.f32 0.6931472, %v470_v40 }
 0x32e   :  { %v332_v44 = vsel %vm331_vm12, %v329_v42, %v326_v41 }
 0x32f   :  { %v333_v45 = vadd.f32 %v332_v44, %v319_v43 }
 0x331   :  { %v335_v46 = vsel %vm334_vm11, %v333_v45, 0.0 }
 0x332   :  { %336 = vadd.xlane.f32.xlu1 %v335_v46 }
 0x3bf   :  { %v337_v47 = vpop.xlane.xlu1 %336 }
 0x3c0   :  { %v338_v48 = vrot.slane %v337_v47, 4 }
 0x3c2   :  { %v339_v49 = vadd.f32 %v338_v48, %v337_v47 }
 0x3c4   :  { %v340_v50 = vrot.slane %v339_v49, 2 }
 0x3c6   :  { %v341_v51 = vadd.f32 %v340_v50, %v339_v49 }
 0x3c8   :  { %v342_v52 = vrot.slane %v341_v51, 1 }
 0x3ca   :  { %v343_v53 = vadd.f32 %v342_v52, %v341_v51 }
 0x3cc   :  { %442 = vpush %v343_v53 }
 0x3fd   :  { %s443_s7 = spop %442 }
 0x3fe   :  { %s345_s8 = smul.f32 0.125, %s443_s7 }
 0x400   :  { %347 = sst [smem:[#allocation3]] %s345_s8 }
 0x401   :  { %480 = shalt.err (!%p477_p2)
}
 0x402   :  { %s494_s11 = smov [#allocation3]  }
 0x403   :  { %356 = dma.smem_to_hbm %s494_s11, 16, %s637_s9, [#allocation4]  }
 0x404   :  { %481 = dma.done.wait [#allocation4], 16  }
 0x405   :  { %482 = vsyncadd [#allocation4], 4294967280 }
 0x406   :  { %364 = sfence }
 0x407   :  { %365 = vsyncpa [#allocation4], 1 }

</bundles_post_ra>
